<compile_context>
chip_gen: v7x
topology: tpu7x:2x2x1
jax: 0.10.0
libtpu: 0.0.40
codegen_flags: <defaults>
</compile_context>

<pallas_src>
import jax
import jax.numpy as jnp
from jax import lax
from jax.experimental import pallas as pl
from jax.experimental.pallas import tpu as pltpu

_LANE = 128
_SUB = 8


def _round_up(x, m):
    return ((x + m - 1) // m) * m


def _cdiv(a, b):
    return -(-a // b)


def _device_kind():
    try:
        return jax.devices()[0].device_kind.lower()
    except Exception:
        return ""


def _vmem_capacity_bytes():
    """Per-core VMEM capacity; conservative (v7x, 64 MiB) fallback on failure."""
    try:
        info = pltpu.get_tpu_info()
        cap = getattr(info, "vmem_capacity_bytes", None)
        if cap:
            return int(cap)
    except Exception:
        pass
    return 64 * 1024 * 1024


def _num_tensorcores():
    """Best-effort TensorCore count (2 on v7x, 1 on v5e/v6e). Perf-only."""
    try:
        info = pltpu.get_tpu_info()
        for attr in ("num_tensorcores", "tensorcore_count", "num_cores",
                     "cores_per_chip", "core_count"):
            v = getattr(info, attr, None)
            if isinstance(v, int) and 0 < v <= 8:
                return v
    except Exception:
        pass
    if "v7" in _device_kind():
        return 2
    return 1


def _make_kernel(B, N, tb, tn, ncb_per_p, mask_rows, mask_cols):
    """Grid (p, cj, ri) = (parallel core chunk, column block, row block).

    Per-step work is VPU elementwise + three reductions into tiny scalar/vector
    accumulators; everything hides under the HBM DMA of the input tiles.
    """

    def kernel(o_ref, t_ref, sse_out, te_out, dcsq_out,
               sse_acc, te_acc, dcol_acc, dcsq_acc):
        p = pl.program_id(0)
        cj = pl.program_id(1)
        ri = pl.program_id(2)
        ncb_pp = pl.num_programs(1)   # column blocks handled by THIS core chunk
        nrb = pl.num_programs(2)

        @pl.when(jnp.logical_and(cj == 0, ri == 0))
        def _init_chunk():
            sse_acc[...] = jnp.zeros_like(sse_acc)
            te_acc[...] = jnp.zeros_like(te_acc)
            dcsq_acc[...] = jnp.zeros_like(dcsq_acc)

        @pl.when(ri == 0)
        def _init_column_block():
            dcol_acc[...] = jnp.zeros_like(dcol_acc)

        o = o_ref[...].astype(jnp.float32)
        t = t_ref[...].astype(jnp.float32)

        # In-kernel boundary masking against the true (B, N): padding rows /
        # columns (and any clamped duplicate block) contribute exactly zero.
        if mask_rows or mask_cols:
            valid = None
            if mask_rows:
                row = ri * tb + lax.broadcasted_iota(jnp.int32, (tb, tn), 0)
                valid = row < B
            if mask_cols:
                col = ((p * ncb_per_p + cj) * tn
                       + lax.broadcasted_iota(jnp.int32, (tb, tn), 1))
                cmask = col < N
                valid = cmask if valid is None else jnp.logical_and(valid, cmask)
            o = jnp.where(valid, o, 0.0)
            t = jnp.where(valid, t, 0.0)

        d = t - o
        sse_acc[...] += jnp.sum(d * d)
        te_acc[...] += jnp.sum(t * t)
        # mean(target,0) - mean(output,0) == mean(target-output,0): a single
        # column-sum accumulator is enough for the DC term.
        dcol_acc[...] += jnp.sum(d, axis=0, keepdims=True)

        @pl.when(ri == nrb - 1)
        def _fold_column_block():
            c = dcol_acc[...]
            dcsq_acc[...] += jnp.sum(c * c)   # each real column folded once

        @pl.when(jnp.logical_and(cj == ncb_pp - 1, ri == nrb - 1))
        def _finalize():
            sse_out[...] = sse_acc[...].reshape(1, 1, 1)
            te_out[...] = te_acc[...].reshape(1, 1, 1)
            dcsq_out[...] = dcsq_acc[...].reshape(1, 1, 1)

    return kernel


def custom_loss(output, target):
    """output, target: (B, N); dim 0 is the axis reduced by torch.mean(x, 0).

    Accepts f32 or bf16 inputs (cast to f32 in-register, f32 accumulation).
    Prefer bf16 where tolerable: the kernel is HBM-bound, so halving the input
    bytes is ~2x on every TPU generation.  Returns the scalar CustomLoss
    forward value as float32.
    """
    assert output.ndim == 2 and target.shape == output.shape
    B, N = output.shape
    in_bytes = max(jnp.dtype(output.dtype).itemsize,
                   jnp.dtype(target.dtype).itemsize)

    # ---- tile-size selection, VMEM-budgeted per TPU generation ----
    vmem_cap = _vmem_capacity_bytes()
    kind = _device_kind()
    # Per-input, per-buffer block cap.  Worst-case in-flight VMEM is
    #   4 * blk (2 inputs x double buffer) + dcol scratch (<= 2 * blk) + misc,
    # so on small-VMEM chips keep blk <= (vmem_cap - headroom) / 6.
    if vmem_cap >= (96 << 20):
        blk_cap_bytes = (8 << 20) if "v5" in kind else (16 << 20)
    else:
        blk_cap_bytes = max(1 << 20, min(8 << 20, (vmem_cap - (12 << 20)) // 6))
    blk_cap_elems = max(_SUB * _LANE, blk_cap_bytes // in_bytes)

    Np0 = _round_up(N, _LANE)
    Bp0 = _round_up(B, _SUB)
    total_bytes = 2 * B * N * in_bytes

    # Parallel split across TensorCores: columns, so the DC column-sums stay
    # core-local (each core owns whole columns).  Only when it can matter.
    ncores = min(_num_tensorcores(), 4)
    P = ncores if (ncores > 1 and Np0 >= ncores * _LANE
                   and total_bytes > (2 << 20)) else 1
    # TODO(synk): very narrow N (<= 128 columns) with huge B still runs on one
    # core; a row-split variant with per-core column-sum outputs would be
    # needed to use both v7x TensorCores in that case.

    # Column tile: lane-dense and as wide as the budget allows (>= 8 rows).
    tn = min(Np0, max(_LANE, ((blk_cap_elems // _SUB) // _LANE) * _LANE))
    ncb = _round_up(max(_cdiv(N, tn), P), P)
    tn = min(Np0, _round_up(_cdiv(N, ncb), _LANE))   # rebalance: minimal padding
    ncb_valid = _cdiv(N, tn)                         # blocks overlapping real data
    ncb_per_p = ncb // P

    # Row tile fills the remaining per-block budget, then rebalances.
    tb = min(Bp0, max(_SUB, ((blk_cap_elems // tn) // _SUB) * _SUB))
    nrb = _cdiv(B, tb)
    tb = min(Bp0, _round_up(_cdiv(B, nrb), _SUB))
    nrb = _cdiv(B, tb)

    mask_rows = (nrb * tb != B)
    mask_cols = (ncb * tn != N)

    # Real VMEM footprint: input double-buffers + (1, tn) scratch padded to 8
    # sublanes (8*tn*4 bytes) + three 1-vreg scalar accumulators + margin.
    scratch_bytes = 8 * tn * 4 + 3 * (_SUB * _LANE * 4)
    footprint = 2 * 2 * tb * tn * in_bytes + scratch_bytes + (2 << 20)
    vmem_limit = int(min(vmem_cap - (4 << 20),
                         max(footprint + (4 << 20), 16 << 20)))

    last_col_block = max(ncb_valid - 1, 0)

    def in_map(p, cj, ri):
        # Clamp so a pure-padding block never indexes past the array; its
        # contribution is zeroed by the in-kernel mask anyway.
        return (ri, jnp.minimum(p * ncb_per_p + cj, last_col_block))

    def out_map(p, cj, ri):
        return (p, 0, 0)

    part_shape = jax.ShapeDtypeStruct((P, 1, 1), jnp.float32)
    part_spec = pl.BlockSpec((1, 1, 1), out_map)

    kernel = _make_kernel(B, N, tb, tn, ncb_per_p, mask_rows, mask_cols)

    sse_p, te_p, dcsq_p = pl.pallas_call(
        kernel,
        out_shape=(part_shape, part_shape, part_shape),
        grid_spec=pltpu.PrefetchScalarGridSpec(
            num_scalar_prefetch=0,
            grid=(P, ncb_per_p, nrb),
            in_specs=[
                pl.BlockSpec((tb, tn), in_map),
                pl.BlockSpec((tb, tn), in_map),
            ],
            out_specs=[part_spec, part_spec, part_spec],
            scratch_shapes=[
                pltpu.VMEM((1, 1), jnp.float32),    # running sum of (t-o)^2
                pltpu.VMEM((1, 1), jnp.float32),    # running sum of t^2
                pltpu.VMEM((1, tn), jnp.float32),   # column sums of (t-o)
                pltpu.VMEM((1, 1), jnp.float32),    # sum of squared column sums
            ],
        ),
        compiler_params=pltpu.CompilerParams(
            dimension_semantics=("parallel", "arbitrary", "arbitrary"),
            vmem_limit_bytes=vmem_limit,
        ),
    )(output, target)

    # Tiny scalar epilogue: combine per-core partials and normalise.
    sse = jnp.sum(sse_p)
    te = jnp.sum(te_p)
    dcsq = jnp.sum(dcsq_p)

    n_total = jnp.float32(B) * jnp.float32(N)
    energy = te / n_total + jnp.float32(1e-5)
    esr = sse / n_total / energy
    dc = dcsq / (jnp.float32(N) * jnp.float32(B) * jnp.float32(B)) / energy
    return jnp.float32(0.75) * esr + jnp.float32(0.25) * dc


def _custom_loss_ref(output, target):
    o = output.astype(jnp.float32)
    t = target.astype(jnp.float32)
    energy = jnp.mean(t ** 2) + 1e-5
    esr = jnp.mean((t - o) ** 2) / energy
    dc = jnp.mean((jnp.mean(t, 0) - jnp.mean(o, 0)) ** 2) / energy
    return 0.75 * esr + 0.25 * dc


if __name__ == "__main__":
    key = jax.random.PRNGKey(0)
    # Aligned single-block path, a larger aligned case, a ragged (in-kernel
    # masked) case, and a bf16 case.
    cases = [
        ((16, 512), jnp.float32, 5e-5),
        ((16, 4096), jnp.float32, 5e-5),
        ((13, 700), jnp.float32, 5e-5),
        ((16, 1024), jnp.bfloat16, 1e-4),
    ]
    for (B, N), dtype, rtol in cases:
        key, k1, k2 = jax.random.split(key, 3)
        output = jax.random.normal(k1, (B, N), dtype=jnp.float32).astype(dtype)
        target = jax.random.normal(k2, (B, N), dtype=jnp.float32).astype(dtype)

        loss = custom_loss(output, target)
        jax.block_until_ready(loss)

        ref = _custom_loss_ref(output, target)
        assert jnp.allclose(loss, ref, rtol=rtol, atol=1e-6), (B, N, loss, ref)

    print("KERNEL_OK")
</pallas_src>

<mosaic_0001>
module attributes {stable_mosaic.version = 11 : i64} {
  func.func @kernel(%arg0: i32, %arg1: i32, %arg2: i32, %arg3: memref<16x512xf32, #tpu.memory_space<vmem>>, %arg4: memref<16x512xf32, #tpu.memory_space<vmem>>, %arg5: memref<1x1x1xf32, #tpu.memory_space<vmem>>, %arg6: memref<1x1x1xf32, #tpu.memory_space<vmem>>, %arg7: memref<1x1x1xf32, #tpu.memory_space<vmem>>, %arg8: memref<1x1xf32, #tpu.memory_space<vmem>>, %arg9: memref<1x1xf32, #tpu.memory_space<vmem>>, %arg10: memref<1x512xf32, #tpu.memory_space<vmem>>, %arg11: memref<1x1xf32, #tpu.memory_space<vmem>>) attributes {dimension_semantics = [#tpu.dimension_semantics<parallel>, #tpu.dimension_semantics<arbitrary>, #tpu.dimension_semantics<arbitrary>], iteration_bounds = array<i64: 1, 1, 1>, scalar_prefetch = 0 : i64, scratch_operands = 4 : i64, tpu.core_type = #tpu.core_type<tc>, window_params = [{transform_indices = @transform_0, window_bounds = array<i64: 16, 512>}, {transform_indices = @transform_1, window_bounds = array<i64: 16, 512>}, {transform_indices = @transform_2, window_bounds = array<i64: 1, 1, 1>}, {transform_indices = @transform_3, window_bounds = array<i64: 1, 1, 1>}, {transform_indices = @transform_4, window_bounds = array<i64: 1, 1, 1>}]} {
    %c0_i32 = arith.constant 0 : i32
    %0 = arith.cmpi eq, %arg1, %c0_i32 : i32
    %c0_i32_0 = arith.constant 0 : i32
    %1 = arith.cmpi eq, %arg2, %c0_i32_0 : i32
    %2 = arith.andi %0, %1 : i1
    %3 = arith.extui %2 : i1 to i32
    %c0_i32_1 = arith.constant 0 : i32
    %4 = arith.cmpi ne, %3, %c0_i32_1 : i32
    scf.if %4 {
      %cst_26 = arith.constant 0.000000e+00 : f32
      %42 = vector.broadcast %cst_26 : f32 to vector<1x1xf32>
      %c0_27 = arith.constant 0 : index
      %c0_28 = arith.constant 0 : index
      %43 = vector.load %arg8[%c0_27, %c0_28] : memref<1x1xf32, #tpu.memory_space<vmem>>, vector<1x1xf32>
      tpu.vector_store %arg8[%c0_27, %c0_28], %42 {strides = array<i32>} : memref<1x1xf32, #tpu.memory_space<vmem>>, vector<1x1xf32>,
      %cst_29 = arith.constant 0.000000e+00 : f32
      %44 = vector.broadcast %cst_29 : f32 to vector<1x1xf32>
      %c0_30 = arith.constant 0 : index
      %c0_31 = arith.constant 0 : index
      %45 = vector.load %arg9[%c0_30, %c0_31] : memref<1x1xf32, #tpu.memory_space<vmem>>, vector<1x1xf32>
      tpu.vector_store %arg9[%c0_30, %c0_31], %44 {strides = array<i32>} : memref<1x1xf32, #tpu.memory_space<vmem>>, vector<1x1xf32>,
      %cst_32 = arith.constant 0.000000e+00 : f32
      %46 = vector.broadcast %cst_32 : f32 to vector<1x1xf32>
      %c0_33 = arith.constant 0 : index
      %c0_34 = arith.constant 0 : index
      %47 = vector.load %arg11[%c0_33, %c0_34] : memref<1x1xf32, #tpu.memory_space<vmem>>, vector<1x1xf32>
      tpu.vector_store %arg11[%c0_33, %c0_34], %46 {strides = array<i32>} : memref<1x1xf32, #tpu.memory_space<vmem>>, vector<1x1xf32>,
    } else {
    }
    %c0_i32_2 = arith.constant 0 : i32
    %5 = arith.cmpi eq, %arg2, %c0_i32_2 : i32
    %6 = arith.extui %5 : i1 to i32
    %c0_i32_3 = arith.constant 0 : i32
    %7 = arith.cmpi ne, %6, %c0_i32_3 : i32
    scf.if %7 {
      %cst_26 = arith.constant 0.000000e+00 : f32
      %42 = vector.broadcast %cst_26 : f32 to vector<1x512xf32>
      %c0_27 = arith.constant 0 : index
      %c0_28 = arith.constant 0 : index
      %43 = vector.load %arg10[%c0_27, %c0_28] : memref<1x512xf32, #tpu.memory_space<vmem>>, vector<1x512xf32>
      tpu.vector_store %arg10[%c0_27, %c0_28], %42 {strides = array<i32>} : memref<1x512xf32, #tpu.memory_space<vmem>>, vector<1x512xf32>,
    } else {
    }
    %c0 = arith.constant 0 : index
    %c0_4 = arith.constant 0 : index
    %8 = vector.load %arg3[%c0, %c0_4] : memref<16x512xf32, #tpu.memory_space<vmem>>, vector<16x512xf32>
    %c0_5 = arith.constant 0 : index
    %c0_6 = arith.constant 0 : index
    %9 = vector.load %arg4[%c0_5, %c0_6] : memref<16x512xf32, #tpu.memory_space<vmem>>, vector<16x512xf32>
    %10 = arith.subf %9, %8 : vector<16x512xf32>
    %c0_7 = arith.constant 0 : index
    %c0_8 = arith.constant 0 : index
    %11 = vector.load %arg8[%c0_7, %c0_8] : memref<1x1xf32, #tpu.memory_space<vmem>>, vector<1x1xf32>
    %12 = arith.mulf %10, %10 : vector<16x512xf32>
    %13 = vector.shape_cast %12 : vector<16x512xf32> to vector<1x16x512xf32>
    %cst = arith.constant dense<0.000000e+00> : vector<1xf32>
    %14 = vector.multi_reduction <add>, %13, %cst [1, 2] : vector<1x16x512xf32> to vector<1xf32>
    %15 = vector.shape_cast %14 : vector<1xf32> to vector<1x1x1xf32>
    %16 = vector.extract %15[0, 0, 0] : f32 from vector<1x1x1xf32>
    %17 = vector.broadcast %16 : f32 to vector<1x1xf32>
    %18 = arith.addf %11, %17 : vector<1x1xf32>
    %c0_9 = arith.constant 0 : index
    %c0_10 = arith.constant 0 : index
    %19 = vector.load %arg8[%c0_9, %c0_10] : memref<1x1xf32, #tpu.memory_space<vmem>>, vector<1x1xf32>
    tpu.vector_store %arg8[%c0_9, %c0_10], %18 {strides = array<i32>} : memref<1x1xf32, #tpu.memory_space<vmem>>, vector<1x1xf32>,
    %c0_11 = arith.constant 0 : index
    %c0_12 = arith.constant 0 : index
    %20 = vector.load %arg9[%c0_11, %c0_12] : memref<1x1xf32, #tpu.memory_space<vmem>>, vector<1x1xf32>
    %21 = arith.mulf %9, %9 : vector<16x512xf32>
    %22 = vector.shape_cast %21 : vector<16x512xf32> to vector<1x16x512xf32>
    %cst_13 = arith.constant dense<0.000000e+00> : vector<1xf32>
    %23 = vector.multi_reduction <add>, %22, %cst_13 [1, 2] : vector<1x16x512xf32> to vector<1xf32>
    %24 = vector.shape_cast %23 : vector<1xf32> to vector<1x1x1xf32>
    %25 = vector.extract %24[0, 0, 0] : f32 from vector<1x1x1xf32>
    %26 = vector.broadcast %25 : f32 to vector<1x1xf32>
    %27 = arith.addf %20, %26 : vector<1x1xf32>
    %c0_14 = arith.constant 0 : index
    %c0_15 = arith.constant 0 : index
    %28 = vector.load %arg9[%c0_14, %c0_15] : memref<1x1xf32, #tpu.memory_space<vmem>>, vector<1x1xf32>
    tpu.vector_store %arg9[%c0_14, %c0_15], %27 {strides = array<i32>} : memref<1x1xf32, #tpu.memory_space<vmem>>, vector<1x1xf32>,
    %c0_16 = arith.constant 0 : index
    %c0_17 = arith.constant 0 : index
    %29 = vector.load %arg10[%c0_16, %c0_17] : memref<1x512xf32, #tpu.memory_space<vmem>>, vector<1x512xf32>
    %cst_18 = arith.constant dense<0.000000e+00> : vector<512xf32>
    %30 = vector.multi_reduction <add>, %10, %cst_18 [0] : vector<16x512xf32> to vector<512xf32>
    %31 = vector.shape_cast %30 : vector<512xf32> to vector<1x512xf32>
    %32 = arith.addf %29, %31 : vector<1x512xf32>
    %c0_19 = arith.constant 0 : index
    %c0_20 = arith.constant 0 : index
    %33 = vector.load %arg10[%c0_19, %c0_20] : memref<1x512xf32, #tpu.memory_space<vmem>>, vector<1x512xf32>
    tpu.vector_store %arg10[%c0_19, %c0_20], %32 {strides = array<i32>} : memref<1x512xf32, #tpu.memory_space<vmem>>, vector<1x512xf32>,
    %c0_i32_21 = arith.constant 0 : i32
    %34 = arith.cmpi eq, %arg2, %c0_i32_21 : i32
    %35 = arith.extui %34 : i1 to i32
    %c0_i32_22 = arith.constant 0 : i32
    %36 = arith.cmpi ne, %35, %c0_i32_22 : i32
    scf.if %36 {
      %c0_26 = arith.constant 0 : index
      %c0_27 = arith.constant 0 : index
      %42 = vector.load %arg10[%c0_26, %c0_27] : memref<1x512xf32, #tpu.memory_space<vmem>>, vector<1x512xf32>
      %c0_28 = arith.constant 0 : index
      %c0_29 = arith.constant 0 : index
      %43 = vector.load %arg11[%c0_28, %c0_29] : memref<1x1xf32, #tpu.memory_space<vmem>>, vector<1x1xf32>
      %44 = arith.mulf %42, %42 : vector<1x512xf32>
      %45 = vector.shape_cast %44 : vector<1x512xf32> to vector<1x1x512xf32>
      %cst_30 = arith.constant dense<0.000000e+00> : vector<1xf32>
      %46 = vector.multi_reduction <add>, %45, %cst_30 [1, 2] : vector<1x1x512xf32> to vector<1xf32>
      %47 = vector.shape_cast %46 : vector<1xf32> to vector<1x1x1xf32>
      %48 = vector.extract %47[0, 0, 0] : f32 from vector<1x1x1xf32>
      %49 = vector.broadcast %48 : f32 to vector<1x1xf32>
      %50 = arith.addf %43, %49 : vector<1x1xf32>
      %c0_31 = arith.constant 0 : index
      %c0_32 = arith.constant 0 : index
      %51 = vector.load %arg11[%c0_31, %c0_32] : memref<1x1xf32, #tpu.memory_space<vmem>>, vector<1x1xf32>
      tpu.vector_store %arg11[%c0_31, %c0_32], %50 {strides = array<i32>} : memref<1x1xf32, #tpu.memory_space<vmem>>, vector<1x1xf32>,
    } else {
    }
    %c0_i32_23 = arith.constant 0 : i32
    %37 = arith.cmpi eq, %arg1, %c0_i32_23 : i32
    %c0_i32_24 = arith.constant 0 : i32
    %38 = arith.cmpi eq, %arg2, %c0_i32_24 : i32
    %39 = arith.andi %37, %38 : i1
    %40 = arith.extui %39 : i1 to i32
    %c0_i32_25 = arith.constant 0 : i32
    %41 = arith.cmpi ne, %40, %c0_i32_25 : i32
    scf.if %41 {
      %c0_26 = arith.constant 0 : index
      %c0_27 = arith.constant 0 : index
      %42 = vector.load %arg8[%c0_26, %c0_27] : memref<1x1xf32, #tpu.memory_space<vmem>>, vector<1x1xf32>
      %43 = vector.shape_cast %42 : vector<1x1xf32> to vector<1x1x1xf32>
      %c0_28 = arith.constant 0 : index
      %c0_29 = arith.constant 0 : index
      %c0_30 = arith.constant 0 : index
      %44 = vector.load %arg5[%c0_28, %c0_29, %c0_30] : memref<1x1x1xf32, #tpu.memory_space<vmem>>, vector<1x1x1xf32>
      tpu.vector_store %arg5[%c0_28, %c0_29, %c0_30], %43 {strides = array<i32>} : memref<1x1x1xf32, #tpu.memory_space<vmem>>, vector<1x1x1xf32>,
      %c0_31 = arith.constant 0 : index
      %c0_32 = arith.constant 0 : index
      %45 = vector.load %arg9[%c0_31, %c0_32] : memref<1x1xf32, #tpu.memory_space<vmem>>, vector<1x1xf32>
      %46 = vector.shape_cast %45 : vector<1x1xf32> to vector<1x1x1xf32>
      %c0_33 = arith.constant 0 : index
      %c0_34 = arith.constant 0 : index
      %c0_35 = arith.constant 0 : index
      %47 = vector.load %arg6[%c0_33, %c0_34, %c0_35] : memref<1x1x1xf32, #tpu.memory_space<vmem>>, vector<1x1x1xf32>
      tpu.vector_store %arg6[%c0_33, %c0_34, %c0_35], %46 {strides = array<i32>} : memref<1x1x1xf32, #tpu.memory_space<vmem>>, vector<1x1x1xf32>,
      %c0_36 = arith.constant 0 : index
      %c0_37 = arith.constant 0 : index
      %48 = vector.load %arg11[%c0_36, %c0_37] : memref<1x1xf32, #tpu.memory_space<vmem>>, vector<1x1xf32>
      %49 = vector.shape_cast %48 : vector<1x1xf32> to vector<1x1x1xf32>
      %c0_38 = arith.constant 0 : index
      %c0_39 = arith.constant 0 : index
      %c0_40 = arith.constant 0 : index
      %50 = vector.load %arg7[%c0_38, %c0_39, %c0_40] : memref<1x1x1xf32, #tpu.memory_space<vmem>>, vector<1x1x1xf32>
      tpu.vector_store %arg7[%c0_38, %c0_39, %c0_40], %49 {strides = array<i32>} : memref<1x1x1xf32, #tpu.memory_space<vmem>>, vector<1x1x1xf32>,
    } else {
    }
    return
  }
  func.func @transform_0(%arg0: i32, %arg1: i32, %arg2: i32) -> (i32, i32) {
    %c1_i32 = arith.constant 1 : i32
    %0 = arith.muli %arg0, %c1_i32 : i32
    %1 = arith.addi %0, %arg1 : i32
    %c0_i32 = arith.constant 0 : i32
    %2 = arith.minsi %1, %c0_i32 : i32
    %c0_i32_0 = arith.constant 0 : i32
    return %arg2, %2 : i32, i32
  }
  func.func @transform_1(%arg0: i32, %arg1: i32, %arg2: i32) -> (i32, i32) {
    %c1_i32 = arith.constant 1 : i32
    %0 = arith.muli %arg0, %c1_i32 : i32
    %1 = arith.addi %0, %arg1 : i32
    %c0_i32 = arith.constant 0 : i32
    %2 = arith.minsi %1, %c0_i32 : i32
    %c0_i32_0 = arith.constant 0 : i32
    return %arg2, %2 : i32, i32
  }
  func.func @transform_2(%arg0: i32, %arg1: i32, %arg2: i32) -> (i32, i32, i32) {
    %c0_i32 = arith.constant 0 : i32
    %c0_i32_0 = arith.constant 0 : i32
    %c0_i32_1 = arith.constant 0 : i32
    return %arg0, %c0_i32, %c0_i32_0 : i32, i32, i32
  }
  func.func @transform_3(%arg0: i32, %arg1: i32, %arg2: i32) -> (i32, i32, i32) {
    %c0_i32 = arith.constant 0 : i32
    %c0_i32_0 = arith.constant 0 : i32
    %c0_i32_1 = arith.constant 0 : i32
    return %arg0, %c0_i32, %c0_i32_0 : i32, i32, i32
  }
  func.func @transform_4(%arg0: i32, %arg1: i32, %arg2: i32) -> (i32, i32, i32) {
    %c0_i32 = arith.constant 0 : i32
    %c0_i32_0 = arith.constant 0 : i32
    %c0_i32_1 = arith.constant 0 : i32
    return %arg0, %c0_i32, %c0_i32_0 : i32, i32, i32
  }
}

</mosaic_0001>

<bundles_post_ra>
// kernel: tpu_custom_call.1
= control target key start
LH: loop header
LB: loop body
LE: loop exit
PB: predicated region body
PF: predicated region fallthrough
CT: control target
= control target key end

     0   :  { %10 = vsyncpa [#allocation7], 0  ;;  %s584_s0 = inlined_call_operand.hbm [shape: f32[16,512], index: 0, kind: input, shape index: {}]   ;;  %s585_s1 = inlined_call_operand.hbm [shape: f32[16,512], index: 1, kind: input, shape index: {}]   ;;  %s586_s2 = inlined_call_operand.hbm [shape: f32[1,1,1], index: 2, kind: output, shape index: {0}]   ;;  %s587_s3 = inlined_call_operand.hbm [shape: f32[1,1,1], index: 3, kind: output, shape index: {1}]   ;;  %s588_s4 = inlined_call_operand.hbm [shape: f32[1,1,1], index: 4, kind: output, shape index: {2}]  }
   0x1   :  { %11 = vsyncpa [#allocation10], 0 }
   0x2   :  { %12 = vsyncpa [#allocation8], 0 }
   0x3   :  { %13 = vsyncpa [#allocation13], 0  ;;  %s462_s15 = smov [#allocation6]   ;;  %s344_s19 = scalar_lea.hbm %s584_s0, 1024 }
   0x4   :  { %s25_s16 = sshll.u32 %s462_s15, 4  ;;  %p345_p0 = scmp.ne.s32.totalorder %s584_s0, %s344_s19  ;;  %s26_s16 = int_to_ptr.vmem [resolvable:$true] %s25_s16 }
   0x5   :  { %p348_p1 = scmp.lt.u32.totalorder %s344_s19, %s584_s0 }
   0x7   :  { %p350_p2 = pnand %p348_p1, %p345_p0 }
   0x9   :  { %353 = shalt.err (!%p350_p2)
}
   0xa   :  { %s354_s24 = scalar_lea.vmem %s26_s16, 1024  ;;  %p359_p4 = scmp.lt.s32.totalorder %s26_s16, %s26_s16 }
   0xb   :  { %p355_p3 = scmp.ne.s32.totalorder %s26_s16, %s354_s24  ;;  %p360_p5 = scmp.lt.s32.totalorder %s354_s24, %s354_s24 }
   0xd   :  { %p361_p6 = por %p360_p5, %p359_p4 }
   0xf   :  { %p362_p7 = pnand %p361_p6, %p355_p3 }
  0x11   :  { %365 = shalt.err (!%p362_p7)
}
  0x12   :  { %s463_s25 = smov 512   ;;  %s464_s26 = smov 32  }
  0x13   :  { %31 = dma.hbm_to_vmem [thread:$0]  %s584_s0, 1024, %s26_s16, [#allocation7], %s463_s25, %s463_s25, %s464_s26  }
  0x14   :  { %s465_s29 = smov [#allocation9]   ;;  %s366_s7 = scalar_lea.hbm %s585_s1, 1024 }
  0x15   :  { %s43_s30 = sshll.u32 %s465_s29, 4  ;;  %p367_p8 = scmp.ne.s32.totalorder %s585_s1, %s366_s7  ;;  %s44_s30 = int_to_ptr.vmem [resolvable:$true] %s43_s30 }
  0x16   :  { %p370_p9 = scmp.lt.u32.totalorder %s366_s7, %s585_s1 }
  0x18   :  { %p372_p10 = pnand %p370_p9, %p367_p8 }
  0x1a   :  { %375 = shalt.err (!%p372_p10)
}
  0x1b   :  { %s376_s12 = scalar_lea.vmem %s44_s30, 1024  ;;  %p381_p12 = scmp.lt.s32.totalorder %s44_s30, %s44_s30 }
  0x1c   :  { %p377_p11 = scmp.ne.s32.totalorder %s44_s30, %s376_s12  ;;  %p382_p13 = scmp.lt.s32.totalorder %s376_s12, %s376_s12 }
  0x1e   :  { %p383_p0 = por %p382_p13, %p381_p12 }
  0x20   :  { %p384_p1 = pnand %p383_p0, %p377_p11 }
  0x22   :  { %387 = shalt.err (!%p384_p1)
}
  0x23   :  { %49 = dma.hbm_to_vmem [thread:$0]  %s585_s1, 1024, %s44_s30, [#allocation10], %s463_s25, %s463_s25, %s464_s26  }
  0x24   :  { %454 = dma.done.wait [#allocation7], 1024  }
  0x25   :  { %455 = vsyncadd [#allocation7], 4294966272 }
  0x26   :  { %456 = dma.done.wait [#allocation10], 1024  }
  0x27   :  { %457 = vsyncadd [#allocation10], 4294966272  ;;  %v77_v0 = vlaneseq  ;;  %v466_v2 = vmov 0.0   ;;  %v82_v3 = vld [vmem:[#allocation6] sm:$0xff]  ;;  %v83_v4 = vld [vmem:[#allocation6 + $0x8] sm:$0xff]  ;;  %vm254_vm1 = vcmask 1040384  }
  0x28   :  { %v84_v5 = vld [vmem:[#allocation6 + $0x10] sm:$0xff]  ;;  %v85_v6 = vld [vmem:[#allocation6 + $0x18] sm:$0xff]  ;;  %v86_v7 = vld [vmem:[#allocation6 + $0x20] sm:$0xff]  ;;  %v467_v30 = vmov 1966171168   ;;  %vm70_vm2 = vcmask 0  }
  0x29   :  { %vm520_vm0 = vcmp.lt.s32.totalorder %v77_v0, 512  ;;  %v87_v8 = vld [vmem:[#allocation6 + $0x28] sm:$0xff]  ;;  %v88_v9 = vld [vmem:[#allocation6 + $0x30] sm:$0xff]  ;;  %v89_v10 = vld [vmem:[#allocation6 + $0x38] sm:$0xff]  ;;  %v199_v31 = vunpack.c.l.s4 %v467_v30  ;;  %v527_v40 = vshrl.u32 %v77_v0, 7  ;;  %s468_s15 = smov [#allocation11]  }
  0x2a   :  { %81 = vst.msk [vmem:[#allocation4] sm:$0xf] %vm520_vm0, %v466_v2  ;;  %v90_v11 = vld [vmem:[#allocation9] sm:$0xff]  ;;  %v91_v12 = vld [vmem:[#allocation9 + $0x8] sm:$0xff]  ;;  %v92_v13 = vld [vmem:[#allocation9 + $0x10] sm:$0xff]  ;;  %s288_s16 = sshll.u32 %s468_s15, 4  ;;  %s289_s16 = int_to_ptr.vmem [resolvable:$true] %s288_s16 }
  0x2b   :  { %v93_v14 = vld [vmem:[#allocation9 + $0x18] sm:$0xff]  ;;  %v98_v15 = vsub.f32 %v90_v11, %v82_v3  ;;  %v94_v16 = vld [vmem:[#allocation9 + $0x20] sm:$0xff]  ;;  %v95_v17 = vld [vmem:[#allocation9 + $0x28] sm:$0xff]  ;;  %v99_v19 = vsub.f32 %v91_v12, %v83_v4  ;;  %v100_v20 = vsub.f32 %v92_v13, %v84_v5  ;;  %v136_v32 = vmul.f32 %v90_v11, %v90_v11  ;;  %71 = vst.msk [vmem:[#allocation2] sm:$0x1] %vm70_vm2, %v466_v2  ;;  %s469_s17 = smov [#allocation12]   ;;  %p393_p3 = scmp.lt.s32.totalorder %s289_s16, %s289_s16 }
  0x2c   :  { %v96_v18 = vld [vmem:[#allocation9 + $0x30] sm:$0xff]  ;;  %v101_v21 = vsub.f32 %v93_v14, %v85_v6  ;;  %v97_v22 = vld [vmem:[#allocation9 + $0x38] sm:$0xff]  ;;  %v102_v23 = vsub.f32 %v94_v16, %v86_v7  ;;  %v103_v24 = vsub.f32 %v95_v17, %v87_v8  ;;  %v137_v35 = vmul.f32 %v91_v12, %v91_v12  ;;  %72 = vst.msk [vmem:[#allocation3] sm:$0x1] %vm70_vm2, %v466_v2  ;;  %s298_s18 = sshll.u32 %s469_s17, 4  ;;  %s388_s19 = scalar_lea.vmem %s289_s16, 16  ;;  %s299_s18 = int_to_ptr.vmem [resolvable:$true] %s298_s18 }
  0x2d   :  { %v104_v25 = vsub.f32 %v96_v18, %v88_v9  ;;  %v107_v26 = vmul.f32 %v98_v15, %v98_v15  ;;  %v105_v27 = vsub.f32 %v97_v22, %v89_v10  ;;  %v108_v28 = vmul.f32 %v99_v19, %v99_v19  ;;  %73 = vst.msk [vmem:[#allocation5] sm:$0x1] %vm70_vm2, %v466_v2  ;;  %p389_p2 = scmp.ne.s32.totalorder %s289_s16, %s388_s19  ;;  %s392_s20 = scalar_lea.vmem %s289_s16, 32 }
  0x2e   :  { %v109_v29 = vmul.f32 %v100_v20, %v100_v20  ;;  %v110_v33 = vmul.f32 %v101_v21, %v101_v21  ;;  %v164_v36 = vadd.f32 %v102_v23, %v98_v15  ;;  %v171_v37 = vadd.f32 %v103_v24, %v99_v19  ;;  %p394_p4 = scmp.lt.s32.totalorder %s392_s20, %s388_s19 }
  0x2f   :  { %v115_v34 = vadd.f32 %v108_v28, %v107_v26  ;;  %v178_v38 = vadd.f32 %v104_v25, %v100_v20  ;;  %v185_v39 = vadd.f32 %v105_v27, %v101_v21  ;;  %v111_v41 = vmul.f32 %v102_v23, %v102_v23 }
  0x30   :  { %v138_v43 = vmul.f32 %v92_v13, %v92_v13  ;;  %v165_v44 = vrot.slane %v164_v36, 4  ;;  %v112_v45 = vmul.f32 %v103_v24, %v103_v24  ;;  %v172_v46 = vrot.slane %v171_v37, 4  ;;  %p395_p5 = por %p394_p4, %p393_p3 }
  0x31   :  { %v116_v42 = vadd.f32 %v115_v34, %v109_v29  ;;  %v179_v47 = vrot.slane %v178_v38, 4  ;;  %v186_v48 = vrot.slane %v185_v39, 4  ;;  %v139_v50 = vmul.f32 %v93_v14, %v93_v14  ;;  %v163_v34 = vld [vmem:[#allocation4] sm:$0xf] }
  0x32   :  { %v166_v51 = vadd.f32 %v165_v44, %v164_v36  ;;  %v144_v52 = vadd.f32 %v137_v35, %v136_v32  ;;  %v113_v53 = vmul.f32 %v104_v25, %v104_v25  ;;  %v173_v54 = vadd.f32 %v172_v46, %v171_v37  ;;  %p396_p6 = pnand %p395_p5, %p389_p2 }
  0x33   :  { %v117_v49 = vadd.f32 %v116_v42, %v110_v33  ;;  %v180_v55 = vadd.f32 %v179_v47, %v178_v38  ;;  %v187_v56 = vadd.f32 %v186_v48, %v185_v39  ;;  %v140_v59 = vmul.f32 %v94_v16, %v94_v16 }
  0x34   :  { %v167_v58 = vrot.slane %v166_v51, 2  ;;  %v145_v60 = vadd.f32 %v144_v52, %v138_v43  ;;  %v114_v61 = vmul.f32 %v105_v27, %v105_v27  ;;  %v174_v62 = vrot.slane %v173_v54, 2 }
  0x35   :  { %v118_v57 = vadd.f32 %v117_v49, %v111_v41  ;;  %v181_v63 = vrot.slane %v180_v55, 2  ;;  %v188_v0 = vrot.slane %v187_v56, 2  ;;  %v141_v5 = vmul.f32 %v95_v17, %v95_v17 }
  0x36   :  { %v168_v4 = vadd.f32 %v167_v58, %v166_v51  ;;  %v146_v6 = vadd.f32 %v145_v60, %v139_v50  ;;  %v175_v7 = vadd.f32 %v174_v62, %v173_v54  ;;  %v200_v10 = vunpack.c.0.s8 %v199_v31 }
  0x37   :  { %v119_v3 = vadd.f32 %v118_v57, %v112_v45  ;;  %v182_v8 = vadd.f32 %v181_v63, %v180_v55  ;;  %v189_v9 = vadd.f32 %v188_v0, %v187_v56  ;;  %v142_v13 = vmul.f32 %v96_v18, %v96_v18 }
  0x38   :  { %v169_v12 = vrot.slane %v168_v4, 1  ;;  %v147_v14 = vadd.f32 %v146_v6, %v140_v59  ;;  %v176_v15 = vrot.slane %v175_v7, 1  ;;  %v143_v23 = vmul.f32 %v97_v22, %v97_v22 }
  0x39   :  { %v120_v11 = vadd.f32 %v119_v3, %v113_v53  ;;  %v183_v19 = vrot.slane %v182_v8, 1  ;;  %v190_v16 = vrot.slane %v189_v9, 1  ;;  %v203_v17 = vsub.s32 %v200_v10, %v527_v40  ;;  %v106_v10 = vld [vmem:[#allocation2] sm:$0x1] }
  0x3a   :  { %v170_v21 = vadd.f32 %v169_v12, %v168_v4  ;;  %v148_v24 = vadd.f32 %v147_v14, %v141_v5  ;;  %v177_v25 = vadd.f32 %v176_v15, %v175_v7  ;;  %v236_v22 = vsub.s32 0, %v527_v40 }
  0x3b   :  { %v121_v20 = vadd.f32 %v120_v11, %v114_v61  ;;  %v184_v26 = vadd.f32 %v183_v19, %v182_v8  ;;  %v191_v27 = vadd.f32 %v190_v16, %v189_v9  ;;  %v240_v37 = vsub.s32 1, %v527_v40 }
  0x3c   :  { %v149_v28 = vadd.f32 %v148_v24, %v142_v13  ;;  %v196_v29 = vcombine.low %v170_v21, %v177_v25  ;;  %v244_v38 = vsub.s32 2, %v527_v40  ;;  %v248_v39 = vsub.s32 3, %v527_v40  ;;  %v135_v13 = vld [vmem:[#allocation3] sm:$0x1] }
  0x3d   :  { %122 = vadd.xlane.f32.xlu0 %v121_v20  ;;  %v197_v30 = vcombine.low %v184_v26, %v191_v27 }
  0x3e   :  { %v150_v31 = vadd.f32 %v149_v28, %v143_v23  ;;  %v204_v32 = vrot.slane %v196_v29, %v203_v17 }
  0x3f   :  { %v211_v18 = vrot.slane %v197_v30, %v203_v17 }
  0x41   :  { %151 = vadd.xlane.f32.xlu0 %v150_v31  ;;  %v212_v33 = vcombine.low %v204_v32, %v211_v18 }
  0x43   :  { %v219_v35 = vrot.slane %v212_v33, %v203_v17 }
  0x45   :  { %v221_v36 = vadd.f32 %v219_v35, %v163_v34 }
  0x47   :  { %226 = vst.msk [vmem:[#allocation4] sm:$0xf] %vm520_vm0, %v221_v36 }
  0x4e   :  { %v230_v41 = vld [vmem:[#allocation4] sm:$0xf] }
  0x4f   :  { %v232_v42 = vmul.f32 %v230_v41, %v230_v41 }
  0x51   :  { %v237_v43 = vrot.slane %v232_v42, %v236_v22  ;;  %v241_v44 = vrot.slane %v232_v42, %v240_v37  ;;  %v245_v45 = vrot.slane %v232_v42, %v244_v38  ;;  %v249_v46 = vrot.slane %v232_v42, %v248_v39 }
  0x53   :  { %v255_v47 = vsel %vm254_vm1, %v237_v43, 0.0  ;;  %v256_v48 = vsel %vm254_vm1, %v241_v44, 0.0  ;;  %v258_v49 = vsel %vm254_vm1, %v245_v45, 0.0  ;;  %v260_v50 = vsel %vm254_vm1, %v249_v46, 0.0 }
  0x54   :  { %v257_v1 = vadd.f32 %v256_v48, %v255_v47 }
  0x56   :  { %v259_v51 = vadd.f32 %v258_v49, %v257_v1 }
  0x58   :  { %v261_v52 = vadd.f32 %v260_v50, %v259_v51 }
  0x5a   :  { %262 = vadd.xlane.f32.xlu1 %v261_v52 }
  0xca   :  { %v123_v40 = vpop.xlane.xlu0 %122 }
  0xcb   :  { %v124_v53 = vrot.slane %v123_v40, 4 }
  0xcd   :  { %v125_v54 = vadd.f32 %v124_v53, %v123_v40 }
  0xce   :  { %v152_v55 = vpop.xlane.xlu0 %151 }
  0xcf   :  { %v126_v56 = vrot.slane %v125_v54, 2  ;;  %v153_v57 = vrot.slane %v152_v55, 4 }
  0xd1   :  { %v154_v58 = vadd.f32 %v153_v57, %v152_v55  ;;  %v127_v59 = vadd.f32 %v126_v56, %v125_v54 }
  0xd3   :  { %v155_v60 = vrot.slane %v154_v58, 2  ;;  %v128_v61 = vrot.slane %v127_v59, 1 }
  0xd5   :  { %v156_v62 = vadd.f32 %v155_v60, %v154_v58  ;;  %v129_v63 = vadd.f32 %v128_v61, %v127_v59 }
  0xd7   :  { %329 = vpush %v129_v63  ;;  %v157_v0 = vrot.slane %v156_v62, 1 }
  0xd9   :  { %v158_v3 = vadd.f32 %v157_v0, %v156_v62 }
  0xdb   :  { %331 = vpush %v158_v3 }
  0xe7   :  { %v263_v4 = vpop.xlane.xlu1 %262 }
  0xe8   :  { %v264_v5 = vrot.slane %v263_v4, 4 }
  0xea   :  { %v265_v6 = vadd.f32 %v264_v5, %v263_v4 }
  0xec   :  { %v266_v2 = vrot.slane %v265_v6, 2 }
  0xee   :  { %v267_v7 = vadd.f32 %v266_v2, %v265_v6 }
  0xf0   :  { %v268_v8 = vrot.slane %v267_v7, 1 }
  0xf2   :  { %v269_v9 = vadd.f32 %v268_v8, %v267_v7 }
  0xf4   :  { %333 = vpush %v269_v9 }
 0x108   :  { %s330_s1 = spop %329 }
 0x109   :  { %v131_v11 = vstv %s330_s1 }
 0x10a   :  { %v132_v12 = vadd.f32 %v131_v11, %v106_v10 }
 0x10c   :  { %134 = vst.msk [vmem:[#allocation2] sm:$0x1] %vm70_vm2, %v132_v12  ;;  %s332_s14 = spop %331 }
 0x10d   :  { %v160_v14 = vstv %s332_s14 }
 0x10e   :  { %v161_v15 = vadd.f32 %v160_v14, %v135_v13 }
 0x110   :  { %162 = vst.msk [vmem:[#allocation3] sm:$0x1] %vm70_vm2, %v161_v15 }
 0x113   :  { %v276_v19 = vld [vmem:[#allocation2] sm:$0x1] }
 0x114   :  { %277 = vst.msk [vmem:[#allocation11] sm:$0x1] %vm70_vm2, %v276_v19 }
 0x115   :  { %399 = shalt.err (!%p396_p6)
}
 0x116   :  { %s400_s23 = scalar_lea.hbm %s586_s2, 16 }
 0x117   :  { %p401_p7 = scmp.ne.s32.totalorder %s586_s2, %s400_s23  ;;  %p404_p8 = scmp.lt.u32.totalorder %s400_s23, %s586_s2 }
 0x119   :  { %p406_p9 = pnand %p404_p8, %p401_p7 }
 0x11b   :  { %409 = shalt.err (!%p406_p9)
}
 0x11c   :  { %291 = dma.vmem_to_hbm [thread:$0]  %s289_s16, 16, %s586_s2, [#allocation8]   ;;  %v278_v16 = vld [vmem:[#allocation3] sm:$0x1] }
 0x11d   :  { %279 = vst.msk [vmem:[#allocation12] sm:$0x1] %vm70_vm2, %v278_v16  ;;  %s410_s30 = scalar_lea.vmem %s299_s18, 16  ;;  %s414_s5 = scalar_lea.vmem %s299_s18, 32 }
 0x11e   :  { %p411_p10 = scmp.ne.s32.totalorder %s299_s18, %s410_s30  ;;  %p415_p11 = scmp.lt.s32.totalorder %s299_s18, %s299_s18 }
 0x11f   :  { %p416_p12 = scmp.lt.s32.totalorder %s414_s5, %s410_s30 }
 0x121   :  { %p417_p13 = por %p416_p12, %p415_p11 }
 0x123   :  { %p418_p0 = pnand %p417_p13, %p411_p10 }
 0x125   :  { %421 = shalt.err (!%p418_p0)
}
 0x126   :  { %s422_s8 = scalar_lea.hbm %s587_s3, 16 }
 0x127   :  { %p423_p1 = scmp.ne.s32.totalorder %s587_s3, %s422_s8  ;;  %p426_p2 = scmp.lt.u32.totalorder %s422_s8, %s587_s3 }
 0x129   :  { %p428_p3 = pnand %p426_p2, %p423_p1 }
 0x12b   :  { %431 = shalt.err (!%p428_p3)
}
 0x12c   :  { %301 = dma.vmem_to_hbm [thread:$0]  %s299_s18, 16, %s587_s3, [#allocation13]   ;;  %v231_v20 = vld [vmem:[#allocation5] sm:$0x1] }
 0x12d   :  { %s334_s13 = spop %333  ;;  %s470_s1 = smov [#allocation14]  }
 0x12e   :  { %v271_v21 = vstv %s334_s13  ;;  %s308_s14 = sshll.u32 %s470_s1, 4  ;;  %s309_s14 = int_to_ptr.vmem [resolvable:$true] %s308_s14 }
 0x12f   :  { %v272_v23 = vadd.f32 %v271_v21, %v231_v20  ;;  %s432_s15 = scalar_lea.vmem %s309_s14, 16  ;;  %s436_s16 = scalar_lea.vmem %s309_s14, 32 }
 0x130   :  { %p433_p4 = scmp.ne.s32.totalorder %s309_s14, %s432_s15  ;;  %p437_p5 = scmp.lt.s32.totalorder %s309_s14, %s309_s14 }
 0x131   :  { %273 = vst.msk [vmem:[#allocation5] sm:$0x1] %vm70_vm2, %v272_v23  ;;  %p438_p6 = scmp.lt.s32.totalorder %s436_s16, %s432_s15 }
 0x133   :  { %p439_p7 = por %p438_p6, %p437_p5 }
 0x135   :  { %p440_p8 = pnand %p439_p7, %p433_p4 }
 0x138   :  { %v280_v24 = vld [vmem:[#allocation5] sm:$0x1] }
 0x139   :  { %281 = vst.msk [vmem:[#allocation14] sm:$0x1] %vm70_vm2, %v280_v24 }
 0x13a   :  { %443 = shalt.err (!%p440_p8)
}
 0x13b   :  { %s444_s18 = scalar_lea.hbm %s588_s4, 16 }
 0x13c   :  { %p445_p9 = scmp.ne.s32.totalorder %s588_s4, %s444_s18  ;;  %p448_p10 = scmp.lt.u32.totalorder %s444_s18, %s588_s4 }
 0x13e   :  { %p450_p11 = pnand %p448_p10, %p445_p9 }
 0x140   :  { %453 = shalt.err (!%p450_p11)
}
 0x141   :  { %311 = dma.vmem_to_hbm [thread:$0]  %s309_s14, 16, %s588_s4, [#allocation13]  }
 0x142   :  { %458 = dma.done.wait [#allocation8], 16  }
 0x143   :  { %459 = vsyncadd [#allocation8], 4294967280 }
 0x144   :  { %460 = dma.done.wait [#allocation13], 32  }
 0x145   :  { %461 = vsyncadd [#allocation13], 4294967264 }
 0x146   :  { %321 = vsyncpa [#allocation7], 1 }
 0x147   :  { %322 = vsyncpa [#allocation10], 1 }
 0x148   :  { %323 = vsyncpa [#allocation8], 1 }
 0x149   :  { %324 = vsyncpa [#allocation13], 1 }

</bundles_post_ra>
